<compile_context>
chip_gen: v7x
topology: tpu7x:2x2x1
jax: 0.10.0
libtpu: 0.0.40
codegen_flags: <defaults>
</compile_context>

<pallas_src>
import functools

import jax
import jax.numpy as jnp
from jax.experimental import pallas as pl
from jax.experimental.pallas import tpu as pltpu


_LANE = 128
_F32_WORK_SLABS = 6   # conservative count of live (C, tile) f32 slabs in the kernel body


def _vmem_config():
    """Per-generation VMEM budget (for tile sizing) and vmem_limit_bytes."""
    cap = None
    try:
        cap = getattr(pltpu.get_tpu_info(), "vmem_capacity_bytes", None)
    except Exception:
        cap = None
    if cap is None:
        cap = 64 * 1024 * 1024            # safe fallback: v7x per-TensorCore VMEM
    if cap >= 100 * 1024 * 1024:          # 128 MiB parts (v5e / v6e)
        budget = 72 * 1024 * 1024
        limit = 100 * 1024 * 1024
    else:                                 # 64 MiB-per-TC parts (v7x)
        budget = 36 * 1024 * 1024
        limit = 52 * 1024 * 1024
    return budget, limit


def _choose_tile_hw(n, c, hw, itemsize, vmem_budget_bytes):
    """Pick the spatial tile (in lanes) from block bytes, not a fixed lane cap."""
    # Per-lane cost of one grid step: double-buffered input block + double-buffered
    # output block + f32 working slabs (mean/var accumulators, diffs, casts, std).
    io_per_lane = (2 * n * c + 2 * n * (c + 1)) * itemsize
    work_per_lane = _F32_WORK_SLABS * c * 4
    bytes_per_lane = io_per_lane + work_per_lane

    tile = vmem_budget_bytes // max(bytes_per_lane, 1)
    tile = max(_LANE, (tile // _LANE) * _LANE)

    # Never exceed the lane-rounded spatial extent.
    hw_groups = pl.cdiv(hw, _LANE)
    tile = min(tile, hw_groups * _LANE)

    # Keep the grid at >= 2 (preferably >= 4) steps when HW allows, so both v7x
    # TensorCores get work under "parallel" semantics and DMA overlaps compute on
    # every generation; never shrink below 512 lanes just to go past 2 steps.
    cap4 = (hw_groups // 4) * _LANE
    cap2 = (hw_groups // 2) * _LANE
    if cap4 >= 512:
        tile = min(tile, cap4)
    elif cap2 >= _LANE:
        tile = min(tile, cap2)
    return tile


def _mbstd_kernel(x_ref, o_ref, *, n, c):
    # x_ref: (n*c, T) block ; o_ref: (n*(c+1), T) block. T is a multiple of 128.
    t = x_ref.shape[-1]
    inv_n = jnp.float32(1.0 / n)

    # ---- Pass 1: per-(channel, pixel) batch mean, fused with the pass-through copy
    #      (each batch slice loaded once; copy keeps the original dtype). ----
    acc = jnp.zeros((c, t), jnp.float32)
    for nn in range(n):
        xs = x_ref[nn * c:(nn + 1) * c, :]
        o_ref[nn * (c + 1):nn * (c + 1) + c, :] = xs
        acc = acc + xs.astype(jnp.float32)
    mu = acc * inv_n                                              # (c, t)

    # ---- Pass 2: biased variance over the batch (two-pass form matches the
    #      reference numerically and avoids E[x^2]-mu^2 cancellation). ----
    var = jnp.zeros((c, t), jnp.float32)
    for nn in range(n):
        d = x_ref[nn * c:(nn + 1) * c, :].astype(jnp.float32) - mu
        var = var + d * d
    std = jnp.sqrt(var * inv_n + 1e-8)                            # (c, t)
    std_row = jnp.mean(std, axis=0, keepdims=True).astype(o_ref.dtype)  # (1, t)

    # ---- Std row appended after each batch element's channels. ----
    for nn in range(n):
        r = nn * (c + 1) + c
        o_ref[r:r + 1, :] = std_row


def minibatch_std_concat(x):
    """averaging='all': x (N, C, H, W) -> (N, C+1, H, W)."""
    n, c, h, w = x.shape
    hw = h * w
    itemsize = jnp.dtype(x.dtype).itemsize

    vmem_budget, vmem_limit = _vmem_config()
    tile = _choose_tile_hw(n, c, hw, itemsize, vmem_budget)
    grid = (pl.cdiv(hw, tile),)

    # Lane-dense, sublane-pad-free view; no wrapper-side padding or post-call slice:
    # the (possibly ragged) last block is handled by Pallas — garbage lanes past hw
    # stay in VMEM and are never written back to the unpadded output.
    x_flat = x.reshape(n * c, hw)

    out_flat = pl.pallas_call(
        functools.partial(_mbstd_kernel, n=n, c=c),
        out_shape=jax.ShapeDtypeStruct((n * (c + 1), hw), x.dtype),
        grid_spec=pltpu.PrefetchScalarGridSpec(
            num_scalar_prefetch=0,
            grid=grid,
            in_specs=[pl.BlockSpec((n * c, tile), lambda i: (0, i))],
            out_specs=pl.BlockSpec((n * (c + 1), tile), lambda i: (0, i)),
        ),
        compiler_params=pltpu.CompilerParams(
            dimension_semantics=("parallel",),
            vmem_limit_bytes=vmem_limit,
        ),
    )(x_flat)

    return out_flat.reshape(n, c + 1, h, w)


def _reference(x):
    # Pure-JAX reference of the PyTorch forward (averaging='all').
    mu = jnp.mean(x, axis=0, keepdims=True)
    std = jnp.sqrt(jnp.mean((x - mu) ** 2, axis=0, keepdims=True) + 1e-8)  # (1, C, H, W)
    std = jnp.mean(std, axis=1, keepdims=True)                             # (1, 1, H, W)
    vals = jnp.broadcast_to(std, (x.shape[0], 1, x.shape[2], x.shape[3]))
    return jnp.concatenate([x, vals], axis=1)


if __name__ == "__main__":
    key = jax.random.PRNGKey(0)

    # Test 1: NCHW GAN-like shape; HW=256 -> 128-lane tile, 2-step parallel grid.
    x = jax.random.normal(key, (2, 4, 16, 16), dtype=jnp.float32)
    out = jax.block_until_ready(minibatch_std_concat(x))
    ref = _reference(x)
    assert out.shape == (2, 5, 16, 16), out.shape
    assert jnp.allclose(out, ref, atol=1e-5, rtol=1e-5), "mismatch vs reference (aligned)"

    # Test 2: odd shape; HW=63 < 128 -> single ragged block (no wrapper pad/slice).
    x2 = jax.random.normal(jax.random.PRNGKey(1), (3, 5, 7, 9), dtype=jnp.float32)
    out2 = jax.block_until_ready(minibatch_std_concat(x2))
    ref2 = _reference(x2)
    assert out2.shape == (3, 6, 7, 9), out2.shape
    assert jnp.allclose(out2, ref2, atol=1e-5, rtol=1e-5), "mismatch vs reference (ragged single block)"

    # Test 3: HW=400 -> tile=256, 2-step grid with a ragged LAST block.
    x3 = jax.random.normal(jax.random.PRNGKey(2), (2, 4, 20, 20), dtype=jnp.float32)
    out3 = jax.block_until_ready(minibatch_std_concat(x3))
    ref3 = _reference(x3)
    assert out3.shape == (2, 5, 20, 20), out3.shape
    assert jnp.allclose(out3, ref3, atol=1e-5, rtol=1e-5), "mismatch vs reference (ragged last block)"

    # TODO(synk): PyTorch forward references self.n even for averaging='all' (an
    # AttributeError in the original); only the intended 'all' branch is implemented.
    # Other averaging modes ('flat'/'spatial'/'none'/'gpool'/'group') are not implemented.
    print("KERNEL_OK")
</pallas_src>

<mosaic_0001>
module attributes {stable_mosaic.version = 11 : i64} {
  func.func @_mbstd_kernel(%arg0: i32, %arg1: memref<8x128xf32, #tpu.memory_space<vmem>>, %arg2: memref<10x128xf32, #tpu.memory_space<vmem>>) attributes {dimension_semantics = [#tpu.dimension_semantics<parallel>], iteration_bounds = array<i64: 2>, scalar_prefetch = 0 : i64, scratch_operands = 0 : i64, tpu.core_type = #tpu.core_type<tc>, window_params = [{transform_indices = @transform_0, window_bounds = array<i64: 8, 128>}, {transform_indices = @transform_1, window_bounds = array<i64: 10, 128>}]} {
    %cst = arith.constant 0.000000e+00 : f32
    %0 = vector.broadcast %cst : f32 to vector<4x128xf32>
    %c0 = arith.constant 0 : index
    %c0_0 = arith.constant 0 : index
    %1 = vector.load %arg1[%c0, %c0_0] : memref<8x128xf32, #tpu.memory_space<vmem>>, vector<4x128xf32>
    %c0_1 = arith.constant 0 : index
    %c0_2 = arith.constant 0 : index
    %2 = vector.load %arg2[%c0_1, %c0_2] : memref<10x128xf32, #tpu.memory_space<vmem>>, vector<4x128xf32>
    tpu.vector_store %arg2[%c0_1, %c0_2], %1 {strides = array<i32>} : memref<10x128xf32, #tpu.memory_space<vmem>>, vector<4x128xf32>,
    %3 = arith.addf %0, %1 : vector<4x128xf32>
    %c4 = arith.constant 4 : index
    %c0_3 = arith.constant 0 : index
    %4 = vector.load %arg1[%c4, %c0_3] : memref<8x128xf32, #tpu.memory_space<vmem>>, vector<4x128xf32>
    %c5 = arith.constant 5 : index
    %c0_4 = arith.constant 0 : index
    %5 = vector.load %arg2[%c5, %c0_4] : memref<10x128xf32, #tpu.memory_space<vmem>>, vector<4x128xf32>
    tpu.vector_store %arg2[%c5, %c0_4], %4 {strides = array<i32>} : memref<10x128xf32, #tpu.memory_space<vmem>>, vector<4x128xf32>,
    %6 = arith.addf %3, %4 : vector<4x128xf32>
    %cst_5 = arith.constant 5.000000e-01 : f32
    %7 = vector.broadcast %cst_5 : f32 to vector<4x128xf32>
    %8 = arith.mulf %6, %7 : vector<4x128xf32>
    %cst_6 = arith.constant 0.000000e+00 : f32
    %9 = vector.broadcast %cst_6 : f32 to vector<4x128xf32>
    %c0_7 = arith.constant 0 : index
    %c0_8 = arith.constant 0 : index
    %10 = vector.load %arg1[%c0_7, %c0_8] : memref<8x128xf32, #tpu.memory_space<vmem>>, vector<4x128xf32>
    %11 = arith.subf %10, %8 : vector<4x128xf32>
    %12 = arith.mulf %11, %11 : vector<4x128xf32>
    %13 = arith.addf %9, %12 : vector<4x128xf32>
    %c4_9 = arith.constant 4 : index
    %c0_10 = arith.constant 0 : index
    %14 = vector.load %arg1[%c4_9, %c0_10] : memref<8x128xf32, #tpu.memory_space<vmem>>, vector<4x128xf32>
    %15 = arith.subf %14, %8 : vector<4x128xf32>
    %16 = arith.mulf %15, %15 : vector<4x128xf32>
    %17 = arith.addf %13, %16 : vector<4x128xf32>
    %cst_11 = arith.constant 5.000000e-01 : f32
    %18 = vector.broadcast %cst_11 : f32 to vector<4x128xf32>
    %19 = arith.mulf %17, %18 : vector<4x128xf32>
    %cst_12 = arith.constant 9.99999993E-9 : f32
    %20 = vector.broadcast %cst_12 : f32 to vector<4x128xf32>
    %21 = arith.addf %19, %20 : vector<4x128xf32>
    %22 = math.sqrt %21 : vector<4x128xf32>
    %cst_13 = arith.constant dense<0.000000e+00> : vector<128xf32>
    %23 = vector.multi_reduction <add>, %22, %cst_13 [0] : vector<4x128xf32> to vector<128xf32>
    %24 = vector.shape_cast %23 : vector<128xf32> to vector<1x128xf32>
    %cst_14 = arith.constant 4.000000e+00 : f32
    %25 = vector.broadcast %cst_14 : f32 to vector<1x128xf32>
    %26 = arith.divf %24, %25 : vector<1x128xf32>
    %c4_15 = arith.constant 4 : index
    %c0_16 = arith.constant 0 : index
    %27 = vector.load %arg2[%c4_15, %c0_16] : memref<10x128xf32, #tpu.memory_space<vmem>>, vector<1x128xf32>
    tpu.vector_store %arg2[%c4_15, %c0_16], %26 {strides = array<i32>} : memref<10x128xf32, #tpu.memory_space<vmem>>, vector<1x128xf32>,
    %c9 = arith.constant 9 : index
    %c0_17 = arith.constant 0 : index
    %28 = vector.load %arg2[%c9, %c0_17] : memref<10x128xf32, #tpu.memory_space<vmem>>, vector<1x128xf32>
    tpu.vector_store %arg2[%c9, %c0_17], %26 {strides = array<i32>} : memref<10x128xf32, #tpu.memory_space<vmem>>, vector<1x128xf32>,
    return
  }
  func.func @transform_0(%arg0: i32) -> (i32, i32) {
    %c0_i32 = arith.constant 0 : i32
    %c0_i32_0 = arith.constant 0 : i32
    return %c0_i32, %arg0 : i32, i32
  }
  func.func @transform_1(%arg0: i32) -> (i32, i32) {
    %c0_i32 = arith.constant 0 : i32
    %c0_i32_0 = arith.constant 0 : i32
    return %c0_i32, %arg0 : i32, i32
  }
}

</mosaic_0001>

<bundles_post_ra>
// kernel: tpu_custom_call.1
= control target key start
LH: loop header
LB: loop body
LE: loop exit
PB: predicated region body
PF: predicated region fallthrough
CT: control target
= control target key end

     0   :  { %6 = vsyncpa [#allocation3], 0  ;;  %s601_s0 = inlined_call_operand.hbm [shape: f32[8,256], index: 0, kind: input, shape index: {}]   ;;  %s602_s1 = inlined_call_operand.hbm [shape: f32[10,256], index: 1, kind: output, shape index: {}]  }
   0x1   :  { %8 = vsyncpa [#allocation3 + $0x1], 0 }
   0x2   :  { %9 = vsyncpa [#allocation4], 0 }
   0x3   :  { %11 = vsyncpa [#allocation4 + $0x1], 0  ;;  %s430_s6 = smov 0   ;;  %s432_s7 = smov 0  }
   0x4   :  { %s434_s8 = smov 0   ;;  %s436_s9 = smov 0  }
   0x5 LB: > { %s451_s10 = sadd.s32 4294967295, %s413_s9   ;;  %s254_s11 = sadd.s32 4294967294, %s413_s9   ;;  %s413_s9 = sphi %s436_s9, %s617_s9   ;;  %s409_s8 = sphi %s434_s8, %s616_s8   ;;  %s405_s7 = sphi %s432_s7, %s615_s7   ;;  %s401_s6 = sphi %s430_s6, %s614_s6  }
   0x6   : > { %s455_s12 = sadd.s32 1, %s413_s9   ;;  %s24_s13 = sadd.s32 1, %s409_s8 }
   0x7   : > { %s21_s14 = ssub.s32 %s413_s9, %s455_s12  ;;  %p31_p0 = scmp.ne.s32.totalorder %s409_s8, %s405_s7 }
   0x8   : > { %p22_p1 = scmp.eq.s32.totalorder %s21_s14, 0  ;;  %p32_p2 = scmp.eq.s32.totalorder %s413_s9, 0 }
   0x9   : > { %p37_p3 = scmp.ne.s32.totalorder %s405_s7, %s401_s6  ;;  %p38_p4 = scmp.eq.s32.totalorder %s451_s10, 0 }
   0xa   : > { %s467_s15 = scalar_select %p22_p1, %s409_s8, %s24_s13  }
   0xb   : > { %p469_p5 = por %p32_p2, %p31_p0  ;;  %p473_p6 = por %p38_p4, %p37_p3 }
   0xc   : > { %p61_p7 = scmp.eq.s32.totalorder %s451_s10, 1  ;;  %p67_p8 = scmp.eq.s32.totalorder %s254_s11, 1 }
   0xd   : > { %p278_p10 = scmp.lt.s32.totalorder %s413_s9, 2  ;;  %s87_s20 = sand.u32 1, %s409_s8  }
   0xe   : > { %p480_p11 = por %p61_p7, %p31_p0  ;;  %p484_p12 = por %p67_p8, %p37_p3 }
   0xf   : > { %s258_s21 = sshll.u32 %s413_s9, 7  ;;  %s257_s22 = sshll.u32 %s87_s20, 3 }
  0x10   : > { %s606_s18 = scalar_select %p480_p11, 1, 0 }
  0x11   : > { %s607_s19 = scalar_select %p484_p12, 1, 0 }
  0x12   : > { %s493_s25 = scalar_lea.hbm %s601_s0, %s258_s21  ;;  %s91_s26 = scalar_lea.vmem [#allocation2], %s257_s22 }
  0x13   : > { %s98_s27 = sshll.u32 %s91_s26, 4  ;;  %p497_p13 = pnand %p278_p10, %p469_p5  ;;  %s501_s27 = int_to_ptr.vmem [resolvable:$true] %s98_s27 }
  0x14   : > { %s88_s29 = scalar_lea.sflag [#allocation3], %s87_s20  ;;  %s317_s30 = scalar_lea.hbm %s493_s25, 128 }
  0x15   : > { %p318_p2 = scmp.ne.s32.totalorder %s493_s25, %s317_s30  ;;  %p319_p3 = pneg %p497_p13 }
  0x16   : > { %s322_s4 = scalar_lea.hbm %s601_s0, 256  ;;  %p323_p5 = scmp.lt.u32.totalorder %s493_s25, %s601_s0 }
  0x17   : > { %p320_p4 = pnand %p319_p3, %p318_p2  ;;  %p324_p8 = scmp.lt.u32.totalorder %s322_s4, %s317_s30 }
  0x18   : > { %p326_p9 = scmp.lt.u32.totalorder %s317_s30, %s493_s25 }
  0x19   : > { %p321_p7 = pneg %p320_p4  ;;  %p325_p10 = por %p324_p8, %p323_p5 }
  0x1b   : > { %p327_p0 = por %p326_p9, %p325_p10 }
  0x1d   : > { %p328_p1 = pnand %p327_p0, %p321_p7 }
  0x1f   : > { %331 = shalt.err (!%p328_p1)
}
  0x20   : > { %s332_s13 = scalar_lea.vmem %s501_s27, 128  ;;  %s415_s14 = smov [#allocation2]  }
  0x21   : > { %p333_p2 = scmp.ne.s32.totalorder %s501_s27, %s332_s13  ;;  %s337_s16 = sshll.u32 %s415_s14, 4  ;;  %s338_s16 = int_to_ptr.vmem [resolvable:$false] %s337_s16 }
  0x22   : > { %s339_s20 = scalar_lea.vmem %s338_s16, 256  ;;  %p340_p11 = scmp.lt.s32.totalorder %s501_s27, %s338_s16 }
  0x23   : > { %p335_p4 = pnand %p333_p2, %p319_p3  ;;  %p341_p5 = scmp.lt.s32.totalorder %s339_s20, %s332_s13 }
  0x25   : > { %p336_p12 = pneg %p335_p4  ;;  %p342_p8 = por %p341_p5, %p340_p11 }
  0x27   : > { %p343_p9 = pnand %p342_p8, %p336_p12 }
  0x29   : > { %346 = shalt.err (!%p343_p9)
}
  0x2a   : > { %273 = dma.hbm_to_vmem [thread:$0]  (!%p497_p13), %s493_s25, 128, %s501_s27, %s88_s29  }
  0x2b   : > { %p609_p0 = scmp.lt.s32.totalorder %s413_s9, 3  ;;  %p610_p1 = scmp.ge.s32.totalorder %s413_s9, 1 }
  0x2d   : > { %p104_p3 = pnand %p610_p1, %p609_p0 }
  0x2e   : > { %s535_s21 = sand.u32 (!%p104_p3), 1, %s405_s7  }
  0x2f   : > { %107 = sbr.rel (%p104_p3) target bundleno = 116 (0x74), region = 24  ;;  %s260_s22 = sshll.u32 (!%p104_p3), %s535_s21, 3 }
  0x30   : > { %s110_s23 = scalar_lea.sflag (!%p104_p3), [#allocation3], %s535_s21  ;;  %s113_s24 = scalar_lea.vmem (!%p104_p3), [#allocation2], %s260_s22 }
  0x36   : > { %392 = dma.done.wait (%p473_p6), %s110_s23, 128  }
  0x37   : > { %394 = vsyncadd (%p473_p6), %s110_s23, 4294967168  ;;  %s261_s25 = sshll.u32 %s535_s21, 4  ;;  %v132_v0 = vld [vmem:[%s113_s24] sm:$0xf]  ;;  %v135_v1 = vld [vmem:[%s113_s24 + $0x4] sm:$0xf] }
  0x38   : > { %s544_s26 = scalar_lea.vmem [#allocation5], %s261_s25  ;;  %v137_v2 = vadd.f32 %v135_v1, %v132_v0  ;;  %v139_v3 = vld [vmem:[%s113_s24] sm:$0xf]  ;;  %v143_v4 = vld [vmem:[%s113_s24 + $0x4] sm:$0xf]  ;;  %vm156_vm2 = vcmask 1043456  }
  0x39   : > { %133 = vst [vmem:[%s544_s26] sm:$0xf] %v132_v0  ;;  %136 = vst [vmem:[%s544_s26 + $0x5] sm:$0xf] %v135_v1  ;;  %s263_s17 = sshll.u32 %s451_s10, 7  ;;  %s181_s27 = sshll.u32 %s544_s26, 4  ;;  %s555_s27 = int_to_ptr.vmem [resolvable:$true] %s181_s27 }
  0x3a   : > { %v138_v5 = vmul.f32 0.5, %v137_v2  ;;  %s553_s30 = scalar_lea.hbm %s602_s1, %s263_s17  ;;  %s169_s2 = scalar_lea.sflag [#allocation4], %s535_s21 }
  0x3b   : > { %s347_s3 = scalar_lea.vmem %s555_s27, 256  ;;  %p611_p11 = scmp.ne.s32.totalorder %s606_s18, 0 }
  0x3c   : > { %v140_v6 = vsub.f32 %v139_v3, %v138_v5  ;;  %v144_v7 = vsub.f32 %v143_v4, %v138_v5  ;;  %p348_p6 = scmp.ne.s32.totalorder %s555_s27, %s347_s3  ;;  %s416_s10 = smov [#allocation5]  }
  0x3d   : > { %s351_s4 = sshll.u32 %s416_s10, 4  ;;  %s352_s4 = int_to_ptr.vmem [resolvable:$false] %s351_s4 }
  0x3e   : > { %v141_v8 = vmul.f32 %v140_v6, %v140_v6  ;;  %v145_v9 = vmul.f32 %v144_v7, %v144_v7  ;;  %p349_p12 = pnand %p348_p6, %p611_p11  ;;  %s353_s5 = scalar_lea.vmem %s352_s4, 512 }
  0x3f   : > { %p354_p7 = scmp.lt.s32.totalorder %s555_s27, %s352_s4  ;;  %p355_p10 = scmp.lt.s32.totalorder %s353_s5, %s347_s3 }
  0x40   : > { %v146_v10 = vadd.f32 %v145_v9, %v141_v8  ;;  %p350_p13 = pneg %p349_p12 }
  0x41   : > { %p356_p2 = por %p355_p10, %p354_p7 }
  0x42   : > { %v147_v11 = vmul.f32 0.5, %v146_v10 }
  0x43   : > { %p357_p4 = pnand %p356_p2, %p350_p13 }
  0x44   : > { %v148_v12 = vadd.f32 1e-08, %v147_v11 }
  0x46   : > { %315 = vrsqrt.f32 %v148_v12  ;;  %vm151_vm0 = vcmp.eq.f32.partialorder %v148_v12, inf  ;;  %v154_v14 = vand.u32 2147483648, %v148_v12  ;;  %vm153_vm1 = vcmp.eq.f32.partialorder %v148_v12, 0.0 }
  0x50   : > { %v316_v13 = vpop.eup %315 }
  0x51   : > { %v150_v15 = vmul.f32 %v316_v13, %v148_v12 }
  0x53   : > { %v152_v16 = vsel %vm151_vm0, %v148_v12, %v150_v15 }
  0x54   : > { %v155_v17 = vsel %vm153_vm1, %v154_v14, %v152_v16 }
  0x55   : > { %v157_v18 = vsel %vm156_vm2, %v155_v17, 0.0 }
  0x56   : > { %v158_v19 = vrot.slane %v157_v18, 4 }
  0x58   : > { %v159_v20 = vadd.f32 %v158_v19, %v157_v18 }
  0x5a   : > { %v160_v21 = vrot.slane %v159_v20, 2 }
  0x5c   : > { %v161_v22 = vadd.f32 %v160_v21, %v159_v20 }
  0x5e   : > { %v162_v23 = vrot.slane %v161_v22, 1 }
  0x60   : > { %v163_v24 = vadd.f32 %v162_v23, %v161_v22 }
  0x62   : > { %v165_v25 = vmul.f32 0.25, %v163_v24 }
  0x64   : > { %166 = vst [vmem:[%s544_s26 + $0x4] sm:$0x1] %v165_v25  ;;  %167 = vst [vmem:[%s544_s26 + $0x9] sm:$0x1] %v165_v25 }
  0x65   : > { %360 = shalt.err (!%p357_p4)
}
  0x66   : > { %s361_s11 = scalar_lea.hbm %s553_s30, 256  ;;  %s365_s16 = scalar_lea.hbm %s602_s1, 512 }
  0x67   : > { %p362_p5 = scmp.ne.s32.totalorder %s553_s30, %s361_s11  ;;  %p366_p0 = scmp.lt.u32.totalorder %s553_s30, %s602_s1 }
  0x68   : > { %p367_p1 = scmp.lt.u32.totalorder %s365_s16, %s361_s11  ;;  %p369_p6 = scmp.lt.u32.totalorder %s361_s11, %s553_s30 }
  0x69   : > { %p363_p8 = pnand %p362_p5, %p611_p11 }
  0x6a   : > { %p368_p3 = por %p367_p1, %p366_p0 }
  0x6b   : > { %p364_p9 = pneg %p363_p8 }
  0x6c   : > { %p370_p12 = por %p369_p6, %p368_p3 }
  0x6e   : > { %p371_p13 = pnand %p370_p12, %p364_p9 }
  0x70   : > { %374 = shalt.err (!%p371_p13)
}
  0x71   : > { %s417_s23 = smov 128   ;;  %s418_s24 = smov 256  }
  0x72   : > { %s419_s25 = smov 8  }
  0x73   : > { %268 = dma.vmem_to_hbm [thread:$0]  (%p611_p11), %s555_s27, 256, %s553_s30, %s169_s2, %s417_s23, %s418_s24, %s419_s25  }
  0x74 PF: > { %s196_s26 = sand.u32 1, %s401_s6   ;;  %p612_p7 = scmp.ne.s32.totalorder %s607_s19, 0 }
  0x75   : > { %p613_p10 = scmp.ge.s32.totalorder %s413_s9, 2  ;;  %s197_s17 = scalar_lea.sflag [#allocation4], %s196_s26 }
  0x77   : > { %p275_p2 = pnand %p613_p10, %p612_p7 }
  0x79   : > { %396 = dma.done.wait (!%p275_p2), %s197_s17, 256  }
  0x7a   : > { %398 = vsyncadd (!%p275_p2), %s197_s17, 4294967040  ;;  %p14_p4 = scmp.ge.s32.totalorder %s455_s12, 4   ;;  %s614_s6 = smov %s405_s7 }
  0x7b   : > { %s615_s7 = smov %s409_s8  ;;  %s616_s8 = smov %s467_s15 }
  0x7c   : > { %s617_s9 = smov %s455_s12  ;;  %16 = sbr.rel (!%p14_p4) target bundleno = 5 (0x5), region = 69 }
  0x83   :  { %202 = vsyncpa [#allocation3], 1 }
  0x84   :  { %204 = vsyncpa [#allocation3 + $0x1], 1 }
  0x85   :  { %205 = vsyncpa [#allocation4], 1 }
  0x86   :  { %207 = vsyncpa [#allocation4 + $0x1], 1 }

</bundles_post_ra>
